<compile_context>
chip_gen: v5e
topology: v5e:2x2
jax: 0.10.0
libtpu: 0.0.40
codegen_flags: <defaults>
</compile_context>

<pallas_src>
import math
import functools

import jax
import jax.numpy as jnp
from jax.experimental import pallas as pl
from jax.experimental.pallas import tpu as pltpu

_SQRT1_2 = 0.7071067811865476
_SQRT_2_OVER_PI = 0.7978845608028654


def _round_up(v, m):
    return ((v + m - 1) // m) * m


def _sublane_multiple(dtype):
    itemsize = jnp.dtype(dtype).itemsize
    if itemsize >= 4:
        return 8
    if itemsize == 2:
        return 16
    return 32


def _vmem_budget_bytes():
    """Generation-aware scoped-VMEM budget (v5e/v6e 128 MiB parts, v7x 64 MiB)."""
    cap = 128 * 1024 * 1024
    try:
        cap = int(getattr(pltpu.get_tpu_info(), "vmem_capacity_bytes", cap))
    except Exception:
        pass
    return min((cap * 3) // 4, 100 * 1024 * 1024)


def _block_spec(shape, index_map, buffers=2):
    """BlockSpec with optional >2-deep pipelining (graceful fallback)."""
    if buffers > 2:
        try:
            return pl.BlockSpec(shape, index_map,
                                pipeline_mode=pl.Buffered(buffers))
        except Exception:
            pass
    return pl.BlockSpec(shape, index_map)


def _apply_activation(y, activation, gelu_approx):
    act = activation.lower()
    if act == 'relu':
        return jnp.maximum(y, 0.0)
    if act == 'leaky_relu':
        # Module spec uses negative_slope=0.2 (StyleGAN2 convention).
        return jnp.where(y >= 0.0, y, 0.2 * y)
    if act == 'elu':
        return jnp.where(y > 0.0, y, jnp.expm1(y))
    if act == 'gelu':
        if gelu_approx:
            # tanh approximation -> routes through the (otherwise idle) EUP slot.
            inner = _SQRT_2_OVER_PI * (y + 0.044715 * y * y * y)
            return 0.5 * y * (1.0 + jnp.tanh(inner))
        # Exact (erf) form = torch.nn.functional.gelu default.
        return 0.5 * y * (1.0 + jax.lax.erf(y * _SQRT1_2))
    if act == 'silu':
        return y * jax.nn.sigmoid(y)
    if act == 'tanh':
        return jnp.tanh(y)
    if act == 'sigmoid':
        return jax.nn.sigmoid(y)
    if act == 'linear':
        return y
    raise ValueError(f'Unsupported activation function: {activation}')


def _masked_layer_norm(y, n_valid, n_block, ln_eps):
    """Row-wise LayerNorm over the first n_valid of n_block columns."""
    inv_n = 1.0 / float(n_valid)
    if n_block > n_valid:
        # Padded columns (zero-padded W / bias => exactly 0 pre-LN) must be
        # excluded from the mean / variance.
        col = jax.lax.broadcasted_iota(jnp.int32, y.shape, 1)
        mask = (col < n_valid).astype(jnp.float32)
        mean = jnp.sum(y * mask, axis=-1, keepdims=True) * inv_n
        centered = (y - mean) * mask
    else:
        mean = jnp.sum(y, axis=-1, keepdims=True) * inv_n
        centered = y - mean
    var = jnp.sum(centered * centered, axis=-1, keepdims=True) * inv_n
    return (y - mean) * jax.lax.rsqrt(var + ln_eps)


# ---------------------------------------------------------------------------
# Kernel 1: K-accumulating matmul with fused bias / (optional) layer-norm /
# activation epilogue at the final K step.
# ---------------------------------------------------------------------------
def _fc_kernel(*refs, activation, gelu_approx, use_bias, ln_affine, fused_ln,
               ln_eps, n_valid, n_block, k_axis, mxu_dtype, use_acc_scratch):
    idx = 0
    x_ref = refs[idx]; idx += 1
    w_ref = refs[idx]; idx += 1
    b_ref = g_ref = bt_ref = None
    if use_bias:
        b_ref = refs[idx]; idx += 1
    if ln_affine:
        g_ref = refs[idx]; idx += 1
        bt_ref = refs[idx]; idx += 1
    o_ref = refs[idx]; idx += 1
    # f32 output -> accumulate directly into the VMEM-resident output block.
    acc_ref = refs[idx] if use_acc_scratch else o_ref

    k = pl.program_id(k_axis)

    @pl.when(k == 0)
    def _():
        acc_ref[...] = jnp.zeros_like(acc_ref)

    x_blk = x_ref[...]
    w_blk = w_ref[...]
    if mxu_dtype is not None:
        x_blk = x_blk.astype(mxu_dtype)
        w_blk = w_blk.astype(mxu_dtype)
    acc_ref[...] += jax.lax.dot_general(
        x_blk, w_blk,
        dimension_numbers=(((1,), (0,)), ((), ())),
        preferred_element_type=jnp.float32,
    ).astype(acc_ref.dtype)

    @pl.when(k == pl.num_programs(k_axis) - 1)
    def _():
        y = acc_ref[...].astype(jnp.float32)
        if use_bias:
            y = y + b_ref[...].astype(jnp.float32)
        if fused_ln:
            y = _masked_layer_norm(y, n_valid, n_block, ln_eps)
            if ln_affine:
                y = (y * g_ref[...].astype(jnp.float32)
                     + bt_ref[...].astype(jnp.float32))
        y = _apply_activation(y, activation, gelu_approx)
        o_ref[...] = y.astype(o_ref.dtype)


# ---------------------------------------------------------------------------
# Kernel 2: standalone LayerNorm + activation (second pass for large N).
# ---------------------------------------------------------------------------
def _ln_act_kernel(*refs, activation, gelu_approx, ln_affine, ln_eps,
                   n_valid, n_block):
    idx = 0
    y_ref = refs[idx]; idx += 1
    g_ref = bt_ref = None
    if ln_affine:
        g_ref = refs[idx]; idx += 1
        bt_ref = refs[idx]; idx += 1
    o_ref = refs[idx]

    y = y_ref[...].astype(jnp.float32)
    y = _masked_layer_norm(y, n_valid, n_block, ln_eps)
    if ln_affine:
        y = y * g_ref[...].astype(jnp.float32) + bt_ref[...].astype(jnp.float32)
    y = _apply_activation(y, activation, gelu_approx)
    o_ref[...] = y.astype(o_ref.dtype)


# ---------------------------------------------------------------------------
# Tile planning (done once per layer; independent of batch size)
# ---------------------------------------------------------------------------
def _choose_tiles(K_pad128, N_pad128, tm, x_item, w_item, out_item,
                  ws_budget, tn_max, tk_max, fixed_tn=None):
    tn = N_pad128 if fixed_tn is not None else min(tn_max, N_pad128)
    tk = min(tk_max, K_pad128)

    def ws(tk_, tn_, w_bufs):
        s = 2 * tm * tk_ * x_item           # x blocks (double buffered)
        s += w_bufs * tk_ * tn_ * w_item    # weight stream
        s += 2 * tm * tn_ * out_item        # output blocks
        s += tm * tn_ * 4                   # f32 accumulator (worst case)
        s += 8 * tn_ * 4                    # bias / gamma / beta rows
        return s

    while True:
        gk = -(-K_pad128 // tk)
        w_bufs = 3 if gk >= 2 else 2        # deepen W stream across K steps
        if ws(tk, tn, w_bufs) <= ws_budget:
            return tk, tn, w_bufs, True
        if w_bufs == 3 and ws(tk, tn, 2) <= ws_budget:
            return tk, tn, 2, True
        if tk > 128:
            tk = max(128, _round_up(tk // 2, 128))
        elif fixed_tn is None and tn > 128:
            tn = max(128, _round_up(tn // 2, 128))
        else:
            return tk, tn, 2, ws(tk, tn, 2) <= ws_budget


# ---------------------------------------------------------------------------
# Layer wrapper (parameters prepped once, reused across calls)
# ---------------------------------------------------------------------------
class FullyConnectedPallas:
    """y = act(layernorm(x @ W.T + b)); W in PyTorch (out, in) layout.

    Weight transpose / padding and tile planning happen ONCE at construction;
    each __call__ only pads x and launches the kernel(s)."""

    def __init__(self, weight, bias=None, *, activation='linear',
                 layer_norm=False, ln_eps=1e-5, ln_weight=None, ln_bias=None,
                 use_bf16_mxu=False, gelu_approx=False,
                 tm_max=256, tn_max=1024, tk_max=1024,
                 fused_ln_override=None):
        N, K = weight.shape
        self.in_features = K
        self.out_features = N
        self.activation = activation
        self.gelu_approx = bool(gelu_approx)
        self.layer_norm = bool(layer_norm)
        self.ln_eps = float(ln_eps)
        self.use_bias = bias is not None
        self.mxu_dtype = jnp.bfloat16 if use_bf16_mxu else None
        self.tm_max = int(tm_max)

        budget = _vmem_budget_bytes()
        self.vmem_limit_bytes = budget
        self.ws_budget = int(budget * 0.85)

        K_pad128 = _round_up(K, 128)
        N_pad128 = _round_up(N, 128)
        x_item = 4
        w_item = 2 if use_bf16_mxu else jnp.dtype(weight.dtype).itemsize
        out_item = 4

        if self.layer_norm:
            tk_f, tn_f, wb_f, fits = _choose_tiles(
                K_pad128, N_pad128, self.tm_max, x_item, w_item, out_item,
                self.ws_budget, tn_max, tk_max, fixed_tn=N_pad128)
            fused = fits if fused_ln_override is None else bool(fused_ln_override)
        else:
            fused = False
        self.fused_ln = self.layer_norm and fused
        self.two_pass = self.layer_norm and not fused

        if self.fused_ln:
            self.tk, self.tn, self.w_buffers = tk_f, tn_f, wb_f
        else:
            self.tk, self.tn, self.w_buffers, _ = _choose_tiles(
                K_pad128, N_pad128, self.tm_max, x_item, w_item, out_item,
                self.ws_budget, tn_max, tk_max)

        self.K_pad = _round_up(K, self.tk)
        self.N_pad = _round_up(N, self.tn)

        # ---- one-time parameter prep, cached in kernel-ready layout ----
        w_t = weight.T                                   # (K, N)
        if use_bf16_mxu:
            w_t = w_t.astype(jnp.bfloat16)               # halves W HBM bytes
        self.w_p = jnp.pad(w_t, ((0, self.K_pad - K), (0, self.N_pad - N)))

        self.b_p = None
        if self.use_bias:
            self.b_p = jnp.pad(
                jnp.asarray(bias, jnp.float32).reshape(1, N),
                ((0, 0), (0, self.N_pad - N)))

        self.has_ln_affine = bool(self.layer_norm and (ln_weight is not None))
        self.ln_g_p = self.ln_b_p = None
        if self.has_ln_affine:
            if ln_bias is None:
                ln_bias = jnp.zeros((N,), jnp.float32)
            self.ln_g_p = jnp.pad(
                jnp.asarray(ln_weight, jnp.float32).reshape(1, N),
                ((0, 0), (0, self.N_pad - N)))
            self.ln_b_p = jnp.pad(
                jnp.asarray(ln_bias, jnp.float32).reshape(1, N),
                ((0, 0), (0, self.N_pad - N)))

    # -----------------------------------------------------------------
    def __call__(self, x):
        B, K = x.shape
        assert K == self.in_features, "in_features mismatch"
        sub = _sublane_multiple(x.dtype)                 # dtype-aware sublane
        tm = min(self.tm_max, _round_up(B, sub))
        M_pad = _round_up(B, tm)
        pad_m, pad_k = M_pad - B, self.K_pad - K
        x_p = jnp.pad(x, ((0, pad_m), (0, pad_k))) if (pad_m or pad_k) else x

        gm = M_pad // tm
        gk = self.K_pad // self.tk

        stage1_act = 'linear' if self.two_pass else self.activation
        stage1_out_dtype = jnp.float32 if self.two_pass else x.dtype
        use_acc_scratch = jnp.dtype(stage1_out_dtype) != jnp.dtype(jnp.float32)
        ln_affine = self.fused_ln and self.has_ln_affine

        args = [x_p, self.w_p]
        if self.use_bias:
            args.append(self.b_p)
        if ln_affine:
            args += [self.ln_g_p, self.ln_b_p]

        if self.fused_ln:
            # Whole (padded) N row resident per block: row-wise LN in the
            # K-finalize.  TODO(synk): with gm == 1 the only parallel axis has
            # extent 1 and one v7x TensorCore idles; the two-pass path (used
            # automatically when N is large) keeps an N-parallel axis instead.
            tn_blk = self.N_pad
            grid = (gm, gk)
            k_axis = 1
            x_spec = pl.BlockSpec((tm, self.tk), lambda i, k: (i, k))
            w_spec = _block_spec((self.tk, tn_blk), lambda i, k: (k, 0),
                                 self.w_buffers)
            vec_spec = pl.BlockSpec((1, tn_blk), lambda i, k: (0, 0))
            o_spec = pl.BlockSpec((tm, tn_blk), lambda i, k: (i, 0))
            dims = ("parallel", "arbitrary")
        else:
            tn_blk = self.tn
            gn = self.N_pad // self.tn
            grid = (gm, gn, gk)
            k_axis = 2
            x_spec = pl.BlockSpec((tm, self.tk), lambda i, j, k: (i, k))
            w_spec = _block_spec((self.tk, tn_blk), lambda i, j, k: (k, j),
                                 self.w_buffers)
            vec_spec = pl.BlockSpec((1, tn_blk), lambda i, j, k: (0, j))
            o_spec = pl.BlockSpec((tm, tn_blk), lambda i, j, k: (i, j))
            dims = ("parallel", "parallel", "arbitrary")

        in_specs = [x_spec, w_spec]
        if self.use_bias:
            in_specs.append(vec_spec)
        if ln_affine:
            in_specs += [vec_spec, vec_spec]

        kernel = functools.partial(
            _fc_kernel,
            activation=stage1_act, gelu_approx=self.gelu_approx,
            use_bias=self.use_bias, ln_affine=ln_affine,
            fused_ln=self.fused_ln, ln_eps=self.ln_eps,
            n_valid=self.out_features, n_block=tn_blk, k_axis=k_axis,
            mxu_dtype=self.mxu_dtype, use_acc_scratch=use_acc_scratch)

        scratch_shapes = ([pltpu.VMEM((tm, tn_blk), jnp.float32)]
                          if use_acc_scratch else [])

        act = self.activation.lower()
        transc = (B * self.out_features
                  if act in ('gelu', 'silu', 'tanh', 'sigmoid', 'elu') else 0)
        cost = pl.CostEstimate(
            flops=2 * B * self.out_features * K,
            transcendentals=transc,
            bytes_accessed=(x.size * x.dtype.itemsize
                            + self.w_p.size * self.w_p.dtype.itemsize
                            + (self.b_p.size * 4 if self.use_bias else 0)
                            + B * self.out_features
                            * jnp.dtype(stage1_out_dtype).itemsize))

        y_p = pl.pallas_call(
            kernel,
            out_shape=jax.ShapeDtypeStruct((M_pad, self.N_pad), stage1_out_dtype),
            grid=grid,
            in_specs=in_specs,
            out_specs=o_spec,
            scratch_shapes=scratch_shapes,
            compiler_params=pltpu.CompilerParams(
                dimension_semantics=dims,
                vmem_limit_bytes=self.vmem_limit_bytes),
            cost_estimate=cost,
        )(*args)

        if self.two_pass:
            y_p = self._ln_act_pass(y_p, x.dtype)

        return y_p[:B, :self.out_features]

    # -----------------------------------------------------------------
    def _ln_act_pass(self, y_p, out_dtype):
        """Second pass: row-block LayerNorm + activation (fixed-size tiles)."""
        M_pad, N_pad = y_p.shape
        tm_ln = min(self.tm_max, M_pad)
        # ~5 row-blocks of f32 (in/out double-buffered + slack) must fit VMEM.
        if M_pad % tm_ln != 0 or 5 * tm_ln * N_pad * 4 > self.ws_budget:
            tm_ln = 8
        args = [y_p]
        in_specs = [pl.BlockSpec((tm_ln, N_pad), lambda i: (i, 0))]
        if self.has_ln_affine:
            args += [self.ln_g_p, self.ln_b_p]
            vec_spec = pl.BlockSpec((1, N_pad), lambda i: (0, 0))
            in_specs += [vec_spec, vec_spec]
        kernel = functools.partial(
            _ln_act_kernel, activation=self.activation,
            gelu_approx=self.gelu_approx, ln_affine=self.has_ln_affine,
            ln_eps=self.ln_eps, n_valid=self.out_features, n_block=N_pad)
        return pl.pallas_call(
            kernel,
            out_shape=jax.ShapeDtypeStruct((M_pad, N_pad), out_dtype),
            grid=(M_pad // tm_ln,),
            in_specs=in_specs,
            out_specs=pl.BlockSpec((tm_ln, N_pad), lambda i: (i, 0)),
            compiler_params=pltpu.CompilerParams(
                dimension_semantics=("parallel",),
                vmem_limit_bytes=self.vmem_limit_bytes),
        )(*args)


def fully_connected_pallas(x, weight, bias=None, **kwargs):
    """One-off functional form. For repeated calls build FullyConnectedPallas
    once (weight transpose + pad is cached) and call it."""
    return FullyConnectedPallas(weight, bias, **kwargs)(x)


# ---------------------------------------------------------------------------
# Deterministic parameter init (mirrors nn.init.xavier_uniform_ + bias init)
# ---------------------------------------------------------------------------
def init_params(key, in_features, out_features, bias=True, dtype=jnp.float32):
    kw, kb = jax.random.split(key)
    a = math.sqrt(6.0 / (in_features + out_features))
    weight = jax.random.uniform(kw, (out_features, in_features),
                                minval=-a, maxval=a, dtype=dtype)
    if bias:
        bound = 1.0 / math.sqrt(in_features)
        b = jax.random.uniform(kb, (out_features,),
                               minval=-bound, maxval=bound, dtype=dtype)
    else:
        b = None
    return weight, b


# Pure-JAX reference for correctness check
def _reference(x, weight, bias, activation, layer_norm, ln_eps=1e-5,
               ln_weight=None, ln_bias=None):
    y = x @ weight.T
    if bias is not None:
        y = y + bias
    if layer_norm:
        mean = jnp.mean(y, axis=-1, keepdims=True)
        var = jnp.mean((y - mean) ** 2, axis=-1, keepdims=True)
        y = (y - mean) * jax.lax.rsqrt(var + ln_eps)
        if ln_weight is not None:
            y = y * ln_weight
        if ln_bias is not None:
            y = y + ln_bias
    return _apply_activation(y, activation, gelu_approx=False)


if __name__ == "__main__":
    key = jax.random.PRNGKey(0)
    k_x, k_p, k_g, k_b2, k_x2, k_x3, k_p2 = jax.random.split(key, 7)

    batch, in_features, out_features = 8, 32, 64
    x = jax.random.normal(k_x, (batch, in_features), dtype=jnp.float32)
    weight, bias = init_params(k_p, in_features, out_features, bias=True)

    def check(out, ref, name, atol=1e-4, rtol=1e-4):
        assert out.shape == ref.shape, f"{name}: shape {out.shape} vs {ref.shape}"
        err = jnp.max(jnp.abs(out - ref))
        assert jnp.allclose(out, ref, atol=atol, rtol=rtol), \
            f"{name}: max abs err {err}"

    # Config 1: bias + LayerNorm (identity affine) + exact GELU — fused-LN path.
    layer1 = FullyConnectedPallas(weight, bias, activation='gelu',
                                  layer_norm=True)
    out1 = jax.block_until_ready(layer1(x))
    check(out1, _reference(x, weight, bias, 'gelu', True), "cfg1")

    # Reuse the prepared layer with a different (ragged) batch -> no re-prep of W.
    x_small = jax.random.normal(k_x2, (5, in_features), dtype=jnp.float32)
    out1b = jax.block_until_ready(layer1(x_small))
    check(out1b, _reference(x_small, weight, bias, 'gelu', True), "cfg1b")

    # Config 2: no bias, no LayerNorm, ReLU (tiled-N path, skipped bias DMA).
    layer2 = FullyConnectedPallas(weight, None, activation='relu',
                                  layer_norm=False)
    out2 = jax.block_until_ready(layer2(x))
    check(out2, _reference(x, weight, None, 'relu', False), "cfg2")

    # Config 3: forced two-pass LayerNorm (large-N fallback) + affine LN + SiLU.
    ln_w = 1.0 + 0.1 * jax.random.normal(k_g, (out_features,), dtype=jnp.float32)
    ln_b = 0.1 * jax.random.normal(k_b2, (out_features,), dtype=jnp.float32)
    layer3 = FullyConnectedPallas(weight, bias, activation='silu',
                                  layer_norm=True, ln_weight=ln_w, ln_bias=ln_b,
                                  fused_ln_override=False)
    out3 = jax.block_until_ready(layer3(x))
    check(out3, _reference(x, weight, bias, 'silu', True,
                           ln_weight=ln_w, ln_bias=ln_b), "cfg3")

    # Config 4: bf16 MXU weight stream (halved W HBM bytes), linear activation.
    layer4 = FullyConnectedPallas(weight, bias, activation='linear',
                                  use_bf16_mxu=True)
    out4 = jax.block_until_ready(layer4(x))
    check(out4, _reference(x, weight, bias, 'linear', False), "cfg4",
          atol=3e-2, rtol=3e-2)

    # Config 5: K large enough for a multi-step K reduction + 3-deep W stream.
    in_big = 2304
    x_big = jax.random.normal(k_x3, (batch, in_big), dtype=jnp.float32)
    w_big, b_big = init_params(k_p2, in_big, out_features, bias=True)
    layer5 = FullyConnectedPallas(w_big, b_big, activation='leaky_relu',
                                  layer_norm=False)
    out5 = jax.block_until_ready(layer5(x_big))
    check(out5, _reference(x_big, w_big, b_big, 'leaky_relu', False), "cfg5",
          atol=1e-3, rtol=1e-3)

    print("KERNEL_OK")
</pallas_src>

<mosaic_0001>
module attributes {stable_mosaic.version = 11 : i64} {
  func.func @_fc_kernel(%arg0: i32, %arg1: i32, %arg2: memref<8x128xf32, #tpu.memory_space<vmem>>, %arg3: memref<128x128xf32, #tpu.memory_space<vmem>>, %arg4: memref<1x128xf32, #tpu.memory_space<vmem>>, %arg5: memref<8x128xf32, #tpu.memory_space<vmem>>) attributes {dimension_semantics = [#tpu.dimension_semantics<parallel>, #tpu.dimension_semantics<arbitrary>], iteration_bounds = array<i64: 1, 1>, scalar_prefetch = 0 : i64, scratch_operands = 0 : i64, tpu.core_type = #tpu.core_type<tc>, window_params = [{transform_indices = @transform_0, window_bounds = array<i64: 8, 128>}, {transform_indices = @transform_1, window_bounds = array<i64: 128, 128>}, {pipeline_mode = #tpu.pipeline_mode<synchronous>, transform_indices = @transform_2, window_bounds = array<i64: 1, 128>}, {transform_indices = @transform_3, window_bounds = array<i64: 8, 128>}]} {
    %c0_i32 = arith.constant 0 : i32
    %0 = arith.cmpi eq, %arg1, %c0_i32 : i32
    %1 = arith.extui %0 : i1 to i32
    %c0_i32_0 = arith.constant 0 : i32
    %2 = arith.cmpi ne, %1, %c0_i32_0 : i32
    scf.if %2 {
      %cst_10 = arith.constant 0.000000e+00 : f32
      %12 = vector.broadcast %cst_10 : f32 to vector<8x128xf32>
      %c0_11 = arith.constant 0 : index
      %c0_12 = arith.constant 0 : index
      %13 = vector.load %arg5[%c0_11, %c0_12] : memref<8x128xf32, #tpu.memory_space<vmem>>, vector<8x128xf32>
      tpu.vector_store %arg5[%c0_11, %c0_12], %12 {strides = array<i32>} : memref<8x128xf32, #tpu.memory_space<vmem>>, vector<8x128xf32>,
    } else {
    }
    %c0 = arith.constant 0 : index
    %c0_1 = arith.constant 0 : index
    %3 = vector.load %arg2[%c0, %c0_1] : memref<8x128xf32, #tpu.memory_space<vmem>>, vector<8x128xf32>
    %c0_2 = arith.constant 0 : index
    %c0_3 = arith.constant 0 : index
    %4 = vector.load %arg3[%c0_2, %c0_3] : memref<128x128xf32, #tpu.memory_space<vmem>>, vector<128x128xf32>
    %c0_4 = arith.constant 0 : index
    %c0_5 = arith.constant 0 : index
    %5 = vector.load %arg5[%c0_4, %c0_5] : memref<8x128xf32, #tpu.memory_space<vmem>>, vector<8x128xf32>
    %cst = arith.constant dense<0.000000e+00> : vector<8x128xf32>
    %6 = tpu.matmul %3, %4, %cst {dimension_numbers = #tpu.dot_dimension_numbers<[1], [0], [0], [1], [0, 0, 1, 1], [], []>} : vector<8x128xf32>, vector<128x128xf32>, vector<8x128xf32> -> vector<8x128xf32>
    %7 = arith.addf %5, %6 : vector<8x128xf32>
    %c0_6 = arith.constant 0 : index
    %c0_7 = arith.constant 0 : index
    %8 = vector.load %arg5[%c0_6, %c0_7] : memref<8x128xf32, #tpu.memory_space<vmem>>, vector<8x128xf32>
    tpu.vector_store %arg5[%c0_6, %c0_7], %7 {strides = array<i32>} : memref<8x128xf32, #tpu.memory_space<vmem>>, vector<8x128xf32>,
    %c0_i32_8 = arith.constant 0 : i32
    %9 = arith.cmpi eq, %arg1, %c0_i32_8 : i32
    %10 = arith.extui %9 : i1 to i32
    %c0_i32_9 = arith.constant 0 : i32
    %11 = arith.cmpi ne, %10, %c0_i32_9 : i32
    scf.if %11 {
      %c0_10 = arith.constant 0 : index
      %c0_11 = arith.constant 0 : index
      %12 = vector.load %arg5[%c0_10, %c0_11] : memref<8x128xf32, #tpu.memory_space<vmem>>, vector<8x128xf32>
      %c0_12 = arith.constant 0 : index
      %c0_13 = arith.constant 0 : index
      %13 = vector.load %arg4[%c0_12, %c0_13] : memref<1x128xf32, #tpu.memory_space<vmem>>, vector<1x128xf32>
      %14 = vector.broadcast %13 : vector<1x128xf32> to vector<8x128xf32>
      %15 = arith.addf %12, %14 : vector<8x128xf32>
      %16 = tpu.iota {dimensions = array<i32: 1>} : vector<8x128xi32>
      %c64_i32 = arith.constant 64 : i32
      %17 = vector.broadcast %c64_i32 : i32 to vector<8x128xi32>
      %18 = arith.cmpi slt, %16, %17 : vector<8x128xi32>
      %19 = arith.extui %18 : vector<8x128xi1> to vector<8x128xi32>
      %20 = arith.sitofp %19 : vector<8x128xi32> to vector<8x128xf32>
      %21 = arith.mulf %15, %20 : vector<8x128xf32>
      %cst_14 = arith.constant dense<0.000000e+00> : vector<8xf32>
      %22 = vector.multi_reduction <add>, %21, %cst_14 [1] : vector<8x128xf32> to vector<8xf32>
      %23 = vector.shape_cast %22 : vector<8xf32> to vector<8x1xf32>
      %cst_15 = arith.constant 1.562500e-02 : f32
      %24 = vector.broadcast %cst_15 : f32 to vector<8x1xf32>
      %25 = arith.mulf %23, %24 : vector<8x1xf32>
      %26 = vector.broadcast %25 : vector<8x1xf32> to vector<8x128xf32>
      %27 = arith.subf %15, %26 : vector<8x128xf32>
      %28 = arith.mulf %27, %20 : vector<8x128xf32>
      %29 = arith.mulf %28, %28 : vector<8x128xf32>
      %cst_16 = arith.constant dense<0.000000e+00> : vector<8xf32>
      %30 = vector.multi_reduction <add>, %29, %cst_16 [1] : vector<8x128xf32> to vector<8xf32>
      %31 = vector.shape_cast %30 : vector<8xf32> to vector<8x1xf32>
      %cst_17 = arith.constant 1.562500e-02 : f32
      %32 = vector.broadcast %cst_17 : f32 to vector<8x1xf32>
      %33 = arith.mulf %31, %32 : vector<8x1xf32>
      %34 = vector.broadcast %25 : vector<8x1xf32> to vector<8x128xf32>
      %35 = arith.subf %15, %34 : vector<8x128xf32>
      %cst_18 = arith.constant 9.99999974E-6 : f32
      %36 = vector.broadcast %cst_18 : f32 to vector<8x1xf32>
      %37 = arith.addf %33, %36 : vector<8x1xf32>
      %38 = math.rsqrt %37 : vector<8x1xf32>
      %39 = vector.broadcast %38 : vector<8x1xf32> to vector<8x128xf32>
      %40 = arith.mulf %35, %39 : vector<8x128xf32>
      %cst_19 = arith.constant 5.000000e-01 : f32
      %41 = vector.broadcast %cst_19 : f32 to vector<8x128xf32>
      %42 = arith.mulf %41, %40 : vector<8x128xf32>
      %cst_20 = arith.constant 0.707106769 : f32
      %43 = vector.broadcast %cst_20 : f32 to vector<8x128xf32>
      %44 = arith.mulf %40, %43 : vector<8x128xf32>
      %45 = math.erf %44 : vector<8x128xf32>
      %cst_21 = arith.constant 1.000000e+00 : f32
      %46 = vector.broadcast %cst_21 : f32 to vector<8x128xf32>
      %47 = arith.addf %46, %45 : vector<8x128xf32>
      %48 = arith.mulf %42, %47 : vector<8x128xf32>
      %c0_22 = arith.constant 0 : index
      %c0_23 = arith.constant 0 : index
      %49 = vector.load %arg5[%c0_22, %c0_23] : memref<8x128xf32, #tpu.memory_space<vmem>>, vector<8x128xf32>
      tpu.vector_store %arg5[%c0_22, %c0_23], %48 {strides = array<i32>} : memref<8x128xf32, #tpu.memory_space<vmem>>, vector<8x128xf32>,
    } else {
    }
    return
  }
  func.func @transform_0(%arg0: i32, %arg1: i32) -> (i32, i32) {
    %c0_i32 = arith.constant 0 : i32
    return %arg0, %arg1 : i32, i32
  }
  func.func @transform_1(%arg0: i32, %arg1: i32) -> (i32, i32) {
    %c0_i32 = arith.constant 0 : i32
    %c0_i32_0 = arith.constant 0 : i32
    return %arg1, %c0_i32 : i32, i32
  }
  func.func @transform_2(%arg0: i32, %arg1: i32) -> (i32, i32) {
    %c0_i32 = arith.constant 0 : i32
    %c0_i32_0 = arith.constant 0 : i32
    %c0_i32_1 = arith.constant 0 : i32
    return %c0_i32, %c0_i32_0 : i32, i32
  }
  func.func @transform_3(%arg0: i32, %arg1: i32) -> (i32, i32) {
    %c0_i32 = arith.constant 0 : i32
    %c0_i32_0 = arith.constant 0 : i32
    return %arg0, %c0_i32 : i32, i32
  }
}

</mosaic_0001>

<bundles_post_ra>
// kernel: tpu_custom_call.1
= control target key start
LH: loop header
LB: loop body
LE: loop exit
PB: predicated region body
PF: predicated region fallthrough
CT: control target
= control target key end

     0   :  { %8 = vsyncpa [#allocation3], 0  ;;  %s318_s0 = inlined_call_operand.hbm [shape: f32[8,128], index: 0, kind: input, shape index: {}]   ;;  %s319_s1 = inlined_call_operand.hbm [shape: f32[128,128], index: 1, kind: input, shape index: {}]   ;;  %s320_s2 = inlined_call_operand.vmem [shape: f32[1,128], index: 2, kind: input, shape index: {}]   ;;  %s321_s3 = inlined_call_operand.hbm [shape: f32[8,128], index: 3, kind: output, shape index: {}]  }
   0x1   :  { %9 = vsyncpa [#allocation6], 0 }
   0x2   :  { %10 = vsyncpa [#allocation4], 0  ;;  %s16_s14 = sshll.u32 %s318_s0, 4  ;;  %s280_s15 = smov [#allocation2]   ;;  %s17_s14 = int_to_ptr.hbm [resolvable:$true] %s16_s14 }
   0x3   :  { %s18_s16 = sshll.u32 %s280_s15, 4  ;;  %s26_s19 = sshll.u32 %s319_s1, 4  ;;  %s19_s16 = int_to_ptr.vmem [resolvable:$true] %s18_s16  ;;  %s27_s19 = int_to_ptr.hbm [resolvable:$true] %s26_s19 }
   0x4   :  { %21 = dma.hbm_to_vmem [thread:$0]  %s17_s14, 128, %s19_s16, [#allocation3]  }
   0x5   :  { %s281_s20 = smov [#allocation5]   ;;  %s282_s22 = smov 128  }
   0x6   :  { %s28_s21 = sshll.u32 %s281_s20, 4  ;;  %s283_s23 = smov 8   ;;  %s29_s21 = int_to_ptr.vmem [resolvable:$true] %s28_s21 }
   0x7   :  { %34 = dma.hbm_to_vmem [thread:$0]  %s27_s19, 2048, %s29_s21, [#allocation6], %s282_s22, %s282_s22, %s283_s23  }
   0x8   :  { %274 = dma.done.wait [#allocation3], 128  }
   0x9   :  { %275 = vsyncadd [#allocation3], 4294967168 }
   0xa   :  { %276 = dma.done.wait [#allocation6], 2048  }
   0xb   :  { %277 = vsyncadd [#allocation6], 4294965248  ;;  %v66_v0 = vld [vmem:[#allocation5 + $0x78] sm:$0xff]  ;;  %v65_v1 = vld [vmem:[#allocation5 + $0x70] sm:$0xff]  ;;  %v99_v17 = vlaneseq  ;;  %v284_v21 = vmov 0.0   ;;  %s178_s27 = sshll.u32 %s321_s3, 4  ;;  %s179_s27 = int_to_ptr.hbm [resolvable:$true] %s178_s27 }
   0xc   :  { %68 = vmatpush.msra.mxu0 %v66_v0  ;;  %v64_v2 = vld [vmem:[#allocation5 + $0x68] sm:$0xff]  ;;  %v63_v3 = vld [vmem:[#allocation5 + $0x60] sm:$0xff]  ;;  %v62_v4 = vld [vmem:[#allocation5 + $0x58] sm:$0xff] }
   0xd   :  { %v61_v5 = vld [vmem:[#allocation5 + $0x50] sm:$0xff]  ;;  %v60_v6 = vld [vmem:[#allocation5 + $0x48] sm:$0xff]  ;;  %v59_v7 = vld [vmem:[#allocation5 + $0x40] sm:$0xff]  ;;  %v100_v18 = vand.u32 127, %v99_v17 }
   0xe   :  { %69 = vmatpush.msra.mxu0 %v65_v1  ;;  %v58_v8 = vld [vmem:[#allocation5 + $0x38] sm:$0xff]  ;;  %v57_v9 = vld [vmem:[#allocation5 + $0x30] sm:$0xff]  ;;  %v56_v10 = vld [vmem:[#allocation5 + $0x28] sm:$0xff] }
   0xf   :  { %v55_v11 = vld [vmem:[#allocation5 + $0x20] sm:$0xff]  ;;  %v54_v12 = vld [vmem:[#allocation5 + $0x18] sm:$0xff]  ;;  %v53_v13 = vld [vmem:[#allocation5 + $0x10] sm:$0xff]  ;;  %vm101_vm0 = vcmp.lt.s32.totalorder %v100_v18, 64 }
  0x10   :  { %70 = vmatpush.msra.mxu0 %v64_v2  ;;  %v52_v14 = vld [vmem:[#allocation5 + $0x8] sm:$0xff]  ;;  %v51_v15 = vld [vmem:[#allocation5] sm:$0xff]  ;;  %v50_v16 = vld [vmem:[#allocation2] sm:$0xff]  ;;  %v189_v22 = vsel %vm101_vm0, 1.0, %v284_v21 }
  0x11   :  { %v197_v19 = vld [vmem:[%s320_s2] ss:$0 sm:$0xff]  ;;  %s285_s2 = smov [#allocation7]  }
  0x12   :  { %71 = vmatpush.msra.mxu0 %v63_v3  ;;  %s176_s24 = sshll.u32 %s285_s2, 4  ;;  %s177_s24 = int_to_ptr.vmem [resolvable:$true] %s176_s24 }
  0x14   :  { %72 = vmatpush.msra.mxu0 %v62_v4 }
  0x16   :  { %73 = vmatpush.msra.mxu0 %v61_v5 }
  0x18   :  { %74 = vmatpush.msra.mxu0 %v60_v6 }
  0x1a   :  { %75 = vmatpush.msra.mxu0 %v59_v7 }
  0x1c   :  { %76 = vmatpush.msra.mxu0 %v58_v8 }
  0x1e   :  { %77 = vmatpush.msra.mxu0 %v57_v9 }
  0x20   :  { %78 = vmatpush.msra.mxu0 %v56_v10 }
  0x22   :  { %79 = vmatpush.msra.mxu0 %v55_v11 }
  0x24   :  { %80 = vmatpush.msra.mxu0 %v54_v12 }
  0x26   :  { %81 = vmatpush.msra.mxu0 %v53_v13 }
  0x28   :  { %82 = vmatpush.msra.mxu0 %v52_v14 }
  0x2a   :  { %83 = vmatpush.msra.mxu0 %v51_v15 }
  0x2b   :  { %84 = vmatmul.f32.vlgmr.msra.gmra.mxu0 %v50_v16 }
  0xa8   :  { %v85_v20 = vpop.f32.mrf.mxu0 }
  0xa9   :  { %v98_v23 = vadd.f32 %v197_v19, %v85_v20 }
  0xab   :  { %v104_v24 = vmul.f32 %v189_v22, %v98_v23 }
  0xad   :  { %105 = vadd.xlane.f32.xlu0 %v104_v24 }
 0x120   :  { %v106_v25 = vpop.xlane.xlu0 %105 }
 0x121   :  { %v107_v26 = vmul.f32 0.015625, %v106_v25 }
 0x123   :  { %v108_v27 = vsub.f32 %v98_v23, %v107_v26 }
 0x125   :  { %v109_v28 = vmul.f32 %v189_v22, %v108_v27 }
 0x127   :  { %v110_v29 = vmul.f32 %v109_v28, %v109_v28 }
 0x129   :  { %111 = vadd.xlane.f32.xlu0 %v110_v29 }
 0x19c   :  { %v112_v30 = vpop.xlane.xlu0 %111 }
 0x19d   :  { %v113_v31 = vmul.f32 0.015625, %v112_v30 }
 0x19f   :  { %v114_v32 = vadd.f32 1e-05, %v113_v31 }
 0x1a1   :  { %198 = vrsqrt.f32 %v114_v32  ;;  %vm121_vm2 = vweird.f32 %v114_v32 }
 0x1a7   :  { %v199_v33 = vpop.eup %198 }
 0x1a8   :  { %v116_v34 = vmul.f32 %v199_v33, %v114_v32  ;;  %vm122_vm1 = vweird.f32 %v199_v33 }
 0x1a9   :  { %vm123_vm3 = vmor %vm121_vm2, %vm122_vm1 }
 0x1aa   :  { %v117_v35 = vmul.f32 %v199_v33, %v116_v34 }
 0x1ac   :  { %v118_v36 = vmul.f32 0.5, %v117_v35 }
 0x1ae   :  { %v119_v37 = vsub.f32 1.5, %v118_v36 }
 0x1b0   :  { %v120_v38 = vmul.f32 %v199_v33, %v119_v37 }
 0x1b2   :  { %v124_v39 = vsel %vm123_vm3, %v199_v33, %v120_v38 }
 0x1b3   :  { %v125_v40 = vmul.f32 %v124_v39, %v108_v27 }
 0x1b5   :  { %v127_v41 = vmul.f32 0.70710677, %v125_v40  ;;  %v126_v13 = vmul.f32 0.5, %v125_v40 }
 0x1b7   :  { %v128_v42 = vmul.f32 %v127_v41, %v127_v41 }
 0x1b9   :  { %v129_v43 = vmin.f32 %v128_v42, 16.0 }
 0x1bb   :  { %v130_v44 = vmul.f32 2.1237322e-06, %v129_v43  ;;  %v141_v45 = vmul.f32 3.8918573e-05, %v129_v43 }
 0x1bd   :  { %v131_v46 = vadd.f32 0.00028619796, %v130_v44  ;;  %v142_v47 = vadd.f32 0.001143296, %v141_v45 }
 0x1bf   :  { %v132_v48 = vmul.f32 %v131_v46, %v129_v43  ;;  %v143_v49 = vmul.f32 %v142_v47, %v129_v43 }
 0x1c1   :  { %v144_v50 = vadd.f32 0.014752088, %v143_v49  ;;  %v133_v51 = vadd.f32 0.0036580483, %v132_v48 }
 0x1c3   :  { %v145_v52 = vmul.f32 %v144_v50, %v129_v43  ;;  %v134_v54 = vmul.f32 %v133_v51, %v129_v43 }
 0x1c5   :  { %v146_v53 = vadd.f32 0.112945676, %v145_v52  ;;  %v135_v57 = vadd.f32 0.05243302, %v134_v54 }
 0x1c7   :  { %v147_v55 = vmul.f32 %v146_v53, %v129_v43  ;;  %v136_v60 = vmul.f32 %v135_v57, %v129_v43 }
 0x1c9   :  { %v148_v56 = vadd.f32 0.4994258, %v147_v55  ;;  %v137_v61 = vadd.f32 0.18741608, %v136_v60 }
 0x1cb   :  { %v149_v58 = vmul.f32 %v148_v56, %v129_v43  ;;  %v138_v63 = vmul.f32 %v137_v61, %v129_v43 }
 0x1cd   :  { %v150_v59 = vadd.f32 1.0, %v149_v58  ;;  %v139_v3 = vadd.f32 1.1283791, %v138_v63 }
 0x1cf   :  { %200 = vrcp.f32 %v150_v59  ;;  %v162_v2 = vand.u32 2147483648, %v150_v59  ;;  %v160_v5 = vand.u32 2147483647, %v150_v59  ;;  %vm156_vm5 = vweird.f32 %v150_v59 }
 0x1d0   :  { %v140_v8 = vmul.f32 %v139_v3, %v127_v41 }
 0x1d1   :  { %v163_v7 = vor.u32 1.1754944e-38, %v162_v2  ;;  %vm161_vm7 = vcmp.eq.f32.partialorder %v160_v5, 8.507059e+37 }
 0x1d5   :  { %v201_v62 = vpop.eup %200 }
 0x1d6   :  { %v152_v0 = vmul.f32 %v201_v62, %v150_v59  ;;  %vm157_vm4 = vweird.f32 %v201_v62 }
 0x1d7   :  { %vm158_vm6 = vmor %vm156_vm5, %vm157_vm4 }
 0x1d8   :  { %v153_v1 = vsub.f32 1.0, %v152_v0 }
 0x1da   :  { %v154_v4 = vmul.f32 %v201_v62, %v153_v1 }
 0x1dc   :  { %v155_v6 = vadd.f32 %v201_v62, %v154_v4 }
 0x1de   :  { %v159_v9 = vsel %vm158_vm6, %v201_v62, %v155_v6 }
 0x1df   :  { %v164_v10 = vsel %vm161_vm7, %v163_v7, %v159_v9 }
 0x1e0   :  { %v165_v11 = vmul.f32 %v164_v10, %v140_v8 }
 0x1e2   :  { %v190_v12 = vclamps-f32 %v165_v11, 1.0 }
 0x1e4   :  { %v168_v14 = vadd.f32 1.0, %v190_v12 }
 0x1e6   :  { %v169_v15 = vmul.f32 %v168_v14, %v126_v13 }
 0x1e8   :  { %170 = vst [vmem:[#allocation7] sm:$0xff] %v169_v15 }
 0x1e9   :  { %181 = dma.vmem_to_hbm [thread:$0]  %s177_s24, 128, %s179_s27, [#allocation4]  }
 0x1ea   :  { %278 = dma.done.wait [#allocation4], 128  }
 0x1eb   :  { %279 = vsyncadd [#allocation4], 4294967168 }
 0x1ec   :  { %186 = vsyncpa [#allocation3], 1 }
 0x1ed   :  { %187 = vsyncpa [#allocation6], 1 }
 0x1ee   :  { %188 = vsyncpa [#allocation4], 1 }

</bundles_post_ra>
